<compile_context>
chip_gen: v7x
topology: tpu7x:2x2x1
jax: 0.10.0
libtpu: 0.0.40
codegen_flags: <defaults>
</compile_context>

<pallas_src>
import functools

import jax
import jax.numpy as jnp
from jax import lax
from jax.experimental import pallas as pl
from jax.experimental.pallas import tpu as pltpu

EPSILON = 1e-7


def _round_up(x, m):
    return (x + m - 1) // m * m


def _f1_partials_kernel(pred_ref, label_ref, out_ref, tp_acc, sp_acc, cnt_acc, *,
                        classes, n_samples, tile, tiles_per_chunk, need_mask):
    """Grid = (chunk [parallel], tile-within-chunk [arbitrary, reduction]).

    pred_ref : (classes, tile)  logits (native dtype), classes on sublanes
    label_ref: (1, tile)        int8 labels
    out_ref  : (1, classes, 3)  per-chunk partials [tp, sum_p, count]
    tp/sp/cnt_acc : (classes, 1) f32 running partials for the current chunk
    """
    j = pl.program_id(1)

    @pl.when(j == 0)
    def _init():
        tp_acc[...] = jnp.zeros_like(tp_acc)
        sp_acc[...] = jnp.zeros_like(sp_acc)
        cnt_acc[...] = jnp.zeros_like(cnt_acc)

    x = pred_ref[...].astype(jnp.float32)            # (C, tile)
    lab = label_ref[...].astype(jnp.int32)           # (1, tile)

    vf = None
    if need_mask:
        # Mask on the *global* sample index (independent of label values and
        # of whatever stale data sits in the padded part of a ragged block).
        i = pl.program_id(0)
        start = (i * tiles_per_chunk + j) * tile
        lane = lax.broadcasted_iota(jnp.int32, (1, tile), 1)
        valid = (start + lane) < n_samples            # (1, tile) bool
        # Zero invalid logits BEFORE exp so garbage can never become NaN/Inf.
        x = jnp.where(valid, x, 0.0)
        vf = valid.astype(jnp.float32)

    # Softmax over the class (sublane) axis -> XLU sublane reductions.
    m = jnp.max(x, axis=0, keepdims=True)             # (1, tile)
    e = jnp.exp(x - m)                                 # EUP
    denom = jnp.sum(e, axis=0, keepdims=True)          # (1, tile)
    p = e / denom                                      # exact (reference parity)

    # Vectorized one-hot: one full-block compare instead of per-class RMWs.
    cls = lax.broadcasted_iota(jnp.int32, (classes, tile), 0)
    y = (lab == cls).astype(jnp.float32)               # (C, tile)

    if need_mask:
        p = p * vf
        y = y * vf

    # Single cross-lane reduction per tile (XLU); accumulate tiny partials.
    tp_acc[...] += jnp.sum(y * p, axis=1, keepdims=True)   # sum(y * p)
    sp_acc[...] += jnp.sum(p, axis=1, keepdims=True)        # sum(p)
    cnt_acc[...] += jnp.sum(y, axis=1, keepdims=True)        # count(y)

    @pl.when(j == pl.num_programs(1) - 1)
    def _finalize():
        out_ref[...] = jnp.concatenate(
            [tp_acc[...], sp_acc[...], cnt_acc[...]], axis=1
        ).reshape(1, classes, 3)


def _vmem_estimate(tile, classes, itemsize):
    # bytes per lane: (classes, tile) blocks pad to >=8 sublanes (f32) or 16
    # (bf16) -> 32 B/lane either way for classes <= 8.
    pred_bpl = max(32, classes * 4)
    label_bpl = 32                       # (1, tile) int8, conservative padding
    inputs = 2 * (pred_bpl + label_bpl) * tile        # double-buffered blocks
    interm = 6 * max(32, classes * 4) * tile          # f32 temporaries x,e,p,y,...
    return inputs + interm + (2 << 20)                # + headroom


@functools.partial(jax.jit,
                   static_argnames=("classes", "epsilon", "tile_n", "num_chunks"))
def f1_loss_pallas(y_pred, y_true, *, classes=3, epsilon=EPSILON,
                   tile_n=65536, num_chunks=2):
    """Pallas implementation of F1Loss.forward.

    y_pred: (N, classes) float logits (float32 or bfloat16, streamed as-is)
    y_true: (N,) integer class ids
    returns scalar float32 loss = 1 - mean(clamped per-class F1)
    """
    assert y_pred.ndim == 2 and y_true.ndim == 1
    n, c = y_pred.shape
    assert c == classes

    itemsize = jnp.dtype(y_pred.dtype).itemsize

    # Sample tile on the lane axis: multiple of 128, capped by tile_n, shrunk
    # if the VMEM estimate (inputs + f32 intermediates) would exceed the cap.
    vmem_cap = 56 << 20                    # stay below v7x's 64 MiB physical VMEM
    tile = max(128, min((int(tile_n) // 128) * 128, _round_up(n, 128)))
    while tile > 1024 and _vmem_estimate(tile, classes, itemsize) > vmem_cap:
        tile //= 2
    tile = max(128, (tile // 128) * 128)

    total_tiles = (n + tile - 1) // tile
    chunks = min(int(num_chunks), total_tiles)        # leading parallel axis
    tiles_per_chunk = (total_tiles + chunks - 1) // chunks
    last_block = total_tiles - 1
    need_mask = (chunks * tiles_per_chunk * tile) != n

    # Lane-dense layout: (classes, N) logits, (1, N) int8 labels. No padding.
    # TODO(synk): accept (classes, N) logits from the producer to skip this pass.
    pred_t = jnp.transpose(y_pred)                     # (C, N), dtype kept
    labels = y_true.astype(jnp.int8).reshape(1, n)     # 1 B/sample HBM traffic

    def block_map(i, j):
        # Clamp so virtual tiles past the end re-read the last real block
        # (their contribution is fully masked by the global-index mask).
        return (0, jnp.minimum(i * tiles_per_chunk + j, last_block))

    vmem_limit = int(min(max(_vmem_estimate(tile, classes, itemsize), 16 << 20),
                         vmem_cap))

    kernel = functools.partial(
        _f1_partials_kernel, classes=classes, n_samples=n, tile=tile,
        tiles_per_chunk=tiles_per_chunk, need_mask=need_mask)

    partials = pl.pallas_call(
        kernel,
        out_shape=jax.ShapeDtypeStruct((chunks, classes, 3), jnp.float32),
        grid_spec=pltpu.PrefetchScalarGridSpec(
            num_scalar_prefetch=0,
            grid=(chunks, tiles_per_chunk),
            in_specs=[
                pl.BlockSpec((classes, tile), block_map),
                pl.BlockSpec((1, tile), block_map),
            ],
            out_specs=pl.BlockSpec((1, classes, 3), lambda i, j: (i, 0, 0)),
            scratch_shapes=[
                pltpu.VMEM((classes, 1), jnp.float32),   # tp partial
                pltpu.VMEM((classes, 1), jnp.float32),   # sum(p) partial
                pltpu.VMEM((classes, 1), jnp.float32),   # label-count partial
            ],
        ),
        compiler_params=pltpu.CompilerParams(
            dimension_semantics=("parallel", "arbitrary"),
            vmem_limit_bytes=vmem_limit,
        ),
    )(pred_t, labels)

    # Tiny O(classes) epilogue in plain JAX: combine per-chunk partials and
    # apply the F1 formula.  (The reference also computes tn but never uses it.)
    stats = jnp.sum(partials, axis=0)                  # (classes, 3)
    tp = stats[:, 0]
    sp = stats[:, 1]                                   # sum of probabilities
    cnt = stats[:, 2]                                  # label histogram
    fp = sp - tp                                       # sum((1-y) * p)
    fn = cnt - tp                                      # sum(y * (1-p))
    precision = tp / (tp + fp + epsilon)
    recall = tp / (tp + fn + epsilon)
    f1 = 2.0 * (precision * recall) / (precision + recall + epsilon)
    f1 = jnp.clip(f1, epsilon, 1.0 - epsilon)
    return 1.0 - jnp.mean(f1)


def f1_loss_ref(y_pred, y_true, classes=3, epsilon=EPSILON):
    """Pure-JAX reference mirroring the PyTorch module."""
    y_true_oh = jax.nn.one_hot(y_true, classes, dtype=jnp.float32)
    y_pred = jax.nn.softmax(y_pred.astype(jnp.float32), axis=1)
    tp = jnp.sum(y_true_oh * y_pred, axis=0)
    fp = jnp.sum((1 - y_true_oh) * y_pred, axis=0)
    fn = jnp.sum(y_true_oh * (1 - y_pred), axis=0)
    precision = tp / (tp + fp + epsilon)
    recall = tp / (tp + fn + epsilon)
    f1 = 2 * (precision * recall) / (precision + recall + epsilon)
    f1 = jnp.clip(f1, epsilon, 1 - epsilon)
    return 1 - jnp.mean(f1)


if __name__ == "__main__":
    classes = 3
    batch, height, width = 2, 15, 17            # flattened segmentation map
    n = batch * height * width                  # 510 samples (ragged vs 128)

    key = jax.random.PRNGKey(0)
    k_pred, k_true = jax.random.split(key)
    y_pred = jax.random.normal(k_pred, (n, classes), dtype=jnp.float32)
    y_true = jax.random.randint(k_true, (n,), 0, classes, dtype=jnp.int32)

    ref = f1_loss_ref(y_pred, y_true, classes=classes)

    # Small tile: exercises the 2-chunk "parallel" split, multi-tile reduction
    # and the ragged-tail masking.  Production default is tile_n=65536.
    loss = jax.block_until_ready(
        f1_loss_pallas(y_pred, y_true, classes=classes, tile_n=256))
    assert jnp.allclose(loss, ref, atol=1e-4, rtol=1e-4), (loss, ref)

    # Default (large-tile) config: single tile / single chunk, still ragged.
    loss_big = jax.block_until_ready(
        f1_loss_pallas(y_pred, y_true, classes=classes))
    assert jnp.allclose(loss_big, ref, atol=1e-4, rtol=1e-4), (loss_big, ref)

    # bf16 logits stream straight through (halves the dominant HBM traffic);
    # reference is evaluated on the same bf16-rounded values.
    y_pred_bf16 = y_pred.astype(jnp.bfloat16)
    ref_bf16 = f1_loss_ref(y_pred_bf16.astype(jnp.float32), y_true, classes=classes)
    loss_bf16 = jax.block_until_ready(
        f1_loss_pallas(y_pred_bf16, y_true, classes=classes, tile_n=256))
    assert jnp.allclose(loss_bf16, ref_bf16, atol=2e-3, rtol=2e-3), (loss_bf16, ref_bf16)

    print("KERNEL_OK")
</pallas_src>

<mosaic_0001>
module attributes {stable_mosaic.version = 11 : i64} {
  func.func @_f1_partials_kernel(%arg0: i32, %arg1: i32, %arg2: memref<3x256xf32, #tpu.memory_space<vmem>>, %arg3: memref<1x256xi8, #tpu.memory_space<vmem>>, %arg4: memref<1x3x3xf32, #tpu.memory_space<vmem>>, %arg5: memref<3x1xf32, #tpu.memory_space<vmem>>, %arg6: memref<3x1xf32, #tpu.memory_space<vmem>>, %arg7: memref<3x1xf32, #tpu.memory_space<vmem>>) attributes {dimension_semantics = [#tpu.dimension_semantics<parallel>, #tpu.dimension_semantics<arbitrary>], iteration_bounds = array<i64: 2, 1>, scalar_prefetch = 0 : i64, scratch_operands = 3 : i64, tpu.core_type = #tpu.core_type<tc>, window_params = [{transform_indices = @transform_0, window_bounds = array<i64: 3, 256>}, {transform_indices = @transform_1, window_bounds = array<i64: 1, 256>}, {transform_indices = @transform_2, window_bounds = array<i64: 1, 3, 3>}]} {
    %c0_i32 = arith.constant 0 : i32
    %0 = arith.cmpi eq, %arg1, %c0_i32 : i32
    %1 = arith.extui %0 : i1 to i32
    %c0_i32_0 = arith.constant 0 : i32
    %2 = arith.cmpi ne, %1, %c0_i32_0 : i32
    scf.if %2 {
      %cst_23 = arith.constant 0.000000e+00 : f32
      %57 = vector.broadcast %cst_23 : f32 to vector<3x1xf32>
      %c0_24 = arith.constant 0 : index
      %c0_25 = arith.constant 0 : index
      %58 = vector.load %arg5[%c0_24, %c0_25] : memref<3x1xf32, #tpu.memory_space<vmem>>, vector<3x1xf32>
      tpu.vector_store %arg5[%c0_24, %c0_25], %57 {strides = array<i32>} : memref<3x1xf32, #tpu.memory_space<vmem>>, vector<3x1xf32>,
      %cst_26 = arith.constant 0.000000e+00 : f32
      %59 = vector.broadcast %cst_26 : f32 to vector<3x1xf32>
      %c0_27 = arith.constant 0 : index
      %c0_28 = arith.constant 0 : index
      %60 = vector.load %arg6[%c0_27, %c0_28] : memref<3x1xf32, #tpu.memory_space<vmem>>, vector<3x1xf32>
      tpu.vector_store %arg6[%c0_27, %c0_28], %59 {strides = array<i32>} : memref<3x1xf32, #tpu.memory_space<vmem>>, vector<3x1xf32>,
      %cst_29 = arith.constant 0.000000e+00 : f32
      %61 = vector.broadcast %cst_29 : f32 to vector<3x1xf32>
      %c0_30 = arith.constant 0 : index
      %c0_31 = arith.constant 0 : index
      %62 = vector.load %arg7[%c0_30, %c0_31] : memref<3x1xf32, #tpu.memory_space<vmem>>, vector<3x1xf32>
      tpu.vector_store %arg7[%c0_30, %c0_31], %61 {strides = array<i32>} : memref<3x1xf32, #tpu.memory_space<vmem>>, vector<3x1xf32>,
    } else {
    }
    %c0 = arith.constant 0 : index
    %c0_1 = arith.constant 0 : index
    %3 = vector.load %arg2[%c0, %c0_1] : memref<3x256xf32, #tpu.memory_space<vmem>>, vector<3x256xf32>
    %c0_2 = arith.constant 0 : index
    %c0_3 = arith.constant 0 : index
    %4 = vector.load %arg3[%c0_2, %c0_3] : memref<1x256xi8, #tpu.memory_space<vmem>>, vector<1x256xi8>
    %5 = arith.extsi %4 : vector<1x256xi8> to vector<1x256xi32>
    %c1_i32 = arith.constant 1 : i32
    %6 = arith.muli %arg0, %c1_i32 : i32
    %7 = arith.addi %6, %arg1 : i32
    %c256_i32 = arith.constant 256 : i32
    %8 = arith.muli %7, %c256_i32 : i32
    %9 = tpu.iota {dimensions = array<i32: 1>} : vector<1x256xi32>
    %10 = vector.broadcast %8 : i32 to vector<1x256xi32>
    %11 = arith.addi %10, %9 : vector<1x256xi32>
    %c510_i32 = arith.constant 510 : i32
    %12 = vector.broadcast %c510_i32 : i32 to vector<1x256xi32>
    %13 = arith.cmpi slt, %11, %12 : vector<1x256xi32>
    %cst = arith.constant 0.000000e+00 : f32
    %14 = vector.shape_cast %13 : vector<1x256xi1> to vector<1x256xi1>
    %15 = vector.broadcast %14 : vector<1x256xi1> to vector<3x256xi1>
    %16 = vector.broadcast %cst : f32 to vector<3x256xf32>
    %17 = arith.select %15, %3, %16 : vector<3x256xi1>, vector<3x256xf32>
    %18 = arith.extui %13 : vector<1x256xi1> to vector<1x256xi32>
    %19 = arith.sitofp %18 : vector<1x256xi32> to vector<1x256xf32>
    %cst_4 = arith.constant dense<0xFF800000> : vector<256xf32>
    %20 = vector.multi_reduction <maximumf>, %17, %cst_4 [0] : vector<3x256xf32> to vector<256xf32>
    %21 = vector.shape_cast %20 : vector<256xf32> to vector<1x256xf32>
    %22 = vector.broadcast %21 : vector<1x256xf32> to vector<3x256xf32>
    %23 = arith.subf %17, %22 : vector<3x256xf32>
    %24 = math.exp %23 : vector<3x256xf32>
    %cst_5 = arith.constant dense<0.000000e+00> : vector<256xf32>
    %25 = vector.multi_reduction <add>, %24, %cst_5 [0] : vector<3x256xf32> to vector<256xf32>
    %26 = vector.shape_cast %25 : vector<256xf32> to vector<1x256xf32>
    %27 = vector.broadcast %26 : vector<1x256xf32> to vector<3x256xf32>
    %28 = arith.divf %24, %27 : vector<3x256xf32>
    %29 = tpu.iota {dimensions = array<i32: 0>} : vector<3x256xi32>
    %30 = vector.broadcast %5 : vector<1x256xi32> to vector<3x256xi32>
    %31 = arith.cmpi eq, %30, %29 : vector<3x256xi32>
    %32 = arith.extui %31 : vector<3x256xi1> to vector<3x256xi32>
    %33 = arith.sitofp %32 : vector<3x256xi32> to vector<3x256xf32>
    %34 = vector.broadcast %19 : vector<1x256xf32> to vector<3x256xf32>
    %35 = arith.mulf %28, %34 : vector<3x256xf32>
    %36 = vector.broadcast %19 : vector<1x256xf32> to vector<3x256xf32>
    %37 = arith.mulf %33, %36 : vector<3x256xf32>
    %c0_6 = arith.constant 0 : index
    %c0_7 = arith.constant 0 : index
    %38 = vector.load %arg5[%c0_6, %c0_7] : memref<3x1xf32, #tpu.memory_space<vmem>>, vector<3x1xf32>
    %39 = arith.mulf %37, %35 : vector<3x256xf32>
    %cst_8 = arith.constant dense<0.000000e+00> : vector<3xf32>
    %40 = vector.multi_reduction <add>, %39, %cst_8 [1] : vector<3x256xf32> to vector<3xf32>
    %41 = vector.shape_cast %40 : vector<3xf32> to vector<3x1xf32>
    %42 = arith.addf %38, %41 : vector<3x1xf32>
    %c0_9 = arith.constant 0 : index
    %c0_10 = arith.constant 0 : index
    %43 = vector.load %arg5[%c0_9, %c0_10] : memref<3x1xf32, #tpu.memory_space<vmem>>, vector<3x1xf32>
    tpu.vector_store %arg5[%c0_9, %c0_10], %42 {strides = array<i32>} : memref<3x1xf32, #tpu.memory_space<vmem>>, vector<3x1xf32>,
    %c0_11 = arith.constant 0 : index
    %c0_12 = arith.constant 0 : index
    %44 = vector.load %arg6[%c0_11, %c0_12] : memref<3x1xf32, #tpu.memory_space<vmem>>, vector<3x1xf32>
    %cst_13 = arith.constant dense<0.000000e+00> : vector<3xf32>
    %45 = vector.multi_reduction <add>, %35, %cst_13 [1] : vector<3x256xf32> to vector<3xf32>
    %46 = vector.shape_cast %45 : vector<3xf32> to vector<3x1xf32>
    %47 = arith.addf %44, %46 : vector<3x1xf32>
    %c0_14 = arith.constant 0 : index
    %c0_15 = arith.constant 0 : index
    %48 = vector.load %arg6[%c0_14, %c0_15] : memref<3x1xf32, #tpu.memory_space<vmem>>, vector<3x1xf32>
    tpu.vector_store %arg6[%c0_14, %c0_15], %47 {strides = array<i32>} : memref<3x1xf32, #tpu.memory_space<vmem>>, vector<3x1xf32>,
    %c0_16 = arith.constant 0 : index
    %c0_17 = arith.constant 0 : index
    %49 = vector.load %arg7[%c0_16, %c0_17] : memref<3x1xf32, #tpu.memory_space<vmem>>, vector<3x1xf32>
    %cst_18 = arith.constant dense<0.000000e+00> : vector<3xf32>
    %50 = vector.multi_reduction <add>, %37, %cst_18 [1] : vector<3x256xf32> to vector<3xf32>
    %51 = vector.shape_cast %50 : vector<3xf32> to vector<3x1xf32>
    %52 = arith.addf %49, %51 : vector<3x1xf32>
    %c0_19 = arith.constant 0 : index
    %c0_20 = arith.constant 0 : index
    %53 = vector.load %arg7[%c0_19, %c0_20] : memref<3x1xf32, #tpu.memory_space<vmem>>, vector<3x1xf32>
    tpu.vector_store %arg7[%c0_19, %c0_20], %52 {strides = array<i32>} : memref<3x1xf32, #tpu.memory_space<vmem>>, vector<3x1xf32>,
    %c0_i32_21 = arith.constant 0 : i32
    %54 = arith.cmpi eq, %arg1, %c0_i32_21 : i32
    %55 = arith.extui %54 : i1 to i32
    %c0_i32_22 = arith.constant 0 : i32
    %56 = arith.cmpi ne, %55, %c0_i32_22 : i32
    scf.if %56 {
      %c0_23 = arith.constant 0 : index
      %c0_24 = arith.constant 0 : index
      %57 = vector.load %arg5[%c0_23, %c0_24] : memref<3x1xf32, #tpu.memory_space<vmem>>, vector<3x1xf32>
      %c0_25 = arith.constant 0 : index
      %c0_26 = arith.constant 0 : index
      %58 = vector.load %arg6[%c0_25, %c0_26] : memref<3x1xf32, #tpu.memory_space<vmem>>, vector<3x1xf32>
      %c0_27 = arith.constant 0 : index
      %c0_28 = arith.constant 0 : index
      %59 = vector.load %arg7[%c0_27, %c0_28] : memref<3x1xf32, #tpu.memory_space<vmem>>, vector<3x1xf32>
      %60 = tpu.concatenate %57, %58, %59 in 1 : vector<3x1xf32>, vector<3x1xf32>, vector<3x1xf32> -> vector<3x3xf32>
      %61 = vector.shape_cast %60 : vector<3x3xf32> to vector<1x3x3xf32>
      %c0_29 = arith.constant 0 : index
      %c0_30 = arith.constant 0 : index
      %c0_31 = arith.constant 0 : index
      %62 = vector.load %arg4[%c0_29, %c0_30, %c0_31] : memref<1x3x3xf32, #tpu.memory_space<vmem>>, vector<1x3x3xf32>
      tpu.vector_store %arg4[%c0_29, %c0_30, %c0_31], %61 {strides = array<i32>} : memref<1x3x3xf32, #tpu.memory_space<vmem>>, vector<1x3x3xf32>,
    } else {
    }
    return
  }
  func.func @transform_0(%arg0: i32, %arg1: i32) -> (i32, i32) {
    %c1_i32 = arith.constant 1 : i32
    %0 = arith.muli %arg0, %c1_i32 : i32
    %1 = arith.addi %0, %arg1 : i32
    %c1_i32_0 = arith.constant 1 : i32
    %2 = arith.minsi %1, %c1_i32_0 : i32
    %c0_i32 = arith.constant 0 : i32
    %c0_i32_1 = arith.constant 0 : i32
    return %c0_i32, %2 : i32, i32
  }
  func.func @transform_1(%arg0: i32, %arg1: i32) -> (i32, i32) {
    %c1_i32 = arith.constant 1 : i32
    %0 = arith.muli %arg0, %c1_i32 : i32
    %1 = arith.addi %0, %arg1 : i32
    %c1_i32_0 = arith.constant 1 : i32
    %2 = arith.minsi %1, %c1_i32_0 : i32
    %c0_i32 = arith.constant 0 : i32
    %c0_i32_1 = arith.constant 0 : i32
    return %c0_i32, %2 : i32, i32
  }
  func.func @transform_2(%arg0: i32, %arg1: i32) -> (i32, i32, i32) {
    %c0_i32 = arith.constant 0 : i32
    %c0_i32_0 = arith.constant 0 : i32
    %c0_i32_1 = arith.constant 0 : i32
    return %arg0, %c0_i32, %c0_i32_0 : i32, i32, i32
  }
}

</mosaic_0001>

<bundles_post_ra>
// kernel: f1_loss_pallas.1
= control target key start
LH: loop header
LB: loop body
LE: loop exit
PB: predicated region body
PF: predicated region fallthrough
CT: control target
= control target key end

     0   :  { %7 = vsyncpa [#allocation6], 0  ;;  %s805_s0 = inlined_call_operand.hbm [shape: f32[3,510], index: 0, kind: input, shape index: {}]   ;;  %s806_s1 = inlined_call_operand.vmem [shape: s8[1,510], index: 1, kind: input, shape index: {}]   ;;  %s807_s2 = inlined_call_operand.vmem [shape: f32[2,3,3], index: 2, kind: output, shape index: {}]  }
   0x1   :  { %9 = vsyncpa [#allocation6 + $0x1], 0  ;;  %s640_s9 = smov 0   ;;  %s642_s10 = smov 0  }
   0x2   :  { %s644_s11 = smov 0   ;;  %s646_s12 = smov 0  }
   0x3   :  { %s648_s13 = smov 0   ;;  %s650_s14 = smov 0  }
   0x4 LB: > { %s453_s15 = sadd.s32 4294967295, %s619_s14   ;;  %s27_s16 = sadd.s32 1, %s615_s13  ;;  %s619_s14 = sphi %s650_s14, %s15_s14   ;;  %s615_s13 = sphi %s648_s13, %s816_s13   ;;  %s611_s12 = sphi %s646_s12, %s815_s12   ;;  %s607_s11 = sphi %s644_s11, %s814_s11   ;;  %s603_s10 = sphi %s642_s10, %s813_s10   ;;  %s599_s9 = sphi %s640_s9, %s812_s9  }
   0x5   : > { %p29_p0 = scmp.ge.s32.totalorder %s27_s16, 2  ;;  %p32_p1 = scmp.lt.s32.totalorder %s615_s13, 1 }
   0x6   : > { %s40_s17 = sadd.s32 1, %s607_s11  ;;  %p47_p2 = scmp.ne.s32.totalorder %s607_s11, %s603_s10 }
   0x7   : > { %s818_s16 = smov (%p29_p0, %s27_s16), 0  ;;  %p48_p4 = scmp.eq.s32.totalorder %s619_s14, 0 }
   0x8   : > { %s33_s18 = scalar_select %p32_p1, %s615_s13, 1 }
   0x9   : > { %p35_p3 = scmp.lt.s32.totalorder %s818_s16, 1  ;;  %p53_p5 = scmp.ne.s32.totalorder %s603_s10, %s599_s9 }
   0xa   : > { %p54_p6 = scmp.eq.s32.totalorder %s453_s15, 0  ;;  %p49_p7 = por %p48_p4, %p47_p2 }
   0xb   : > { %s36_s19 = scalar_select %p35_p3, %s818_s16, 1 }
   0xc   : > { %p681_p8 = por %p54_p6, %p53_p5  ;;  %p478_p10 = scmp.lt.s32.totalorder %s619_s14, 2 }
   0xd   : > { %s37_s21 = ssub.s32 %s33_s18, %s36_s19  ;;  %s135_s22 = sand.u32 1, %s607_s11  }
   0xe   : > { %p38_p9 = scmp.eq.s32.totalorder %s37_s21, 0  ;;  %s471_s23 = sshll.u32 %s33_s18, 7 }
   0xf   : > { %s457_s25 = sshll.u32 %s135_s22, 3  ;;  %s693_s28 = scalar_lea.hbm %s805_s0, %s471_s23 }
  0x10   : > { %s688_s24 = scalar_select %p38_p9, %s607_s11, %s40_s17  }
  0x11   : > { %s139_s29 = scalar_lea.vmem [#allocation5], %s457_s25  ;;  %p695_p11 = pnand %p478_p10, %p49_p7 }
  0x12   : > { %s150_s30 = sshll.u32 %s139_s29, 4  ;;  %s136_s4 = scalar_lea.sflag [#allocation6], %s135_s22  ;;  %s699_s30 = int_to_ptr.vmem [resolvable:$true] %s150_s30 }
  0x13   : > { %s539_s5 = scalar_lea.hbm %s693_s28, 128  ;;  %p541_p1 = pneg %p695_p11 }
  0x14   : > { %p540_p0 = scmp.ne.s32.totalorder %s693_s28, %s539_s5  ;;  %s544_s8 = scalar_lea.hbm %s805_s0, 256 }
  0x15   : > { %p545_p4 = scmp.lt.u32.totalorder %s693_s28, %s805_s0  ;;  %p546_p5 = scmp.lt.u32.totalorder %s544_s8, %s539_s5 }
  0x16   : > { %p542_p2 = pnand %p541_p1, %p540_p0  ;;  %p548_p7 = scmp.lt.u32.totalorder %s539_s5, %s693_s28 }
  0x17   : > { %p547_p6 = por %p546_p5, %p545_p4 }
  0x18   : > { %p543_p3 = pneg %p542_p2 }
  0x19   : > { %p549_p9 = por %p548_p7, %p547_p6 }
  0x1b   : > { %p550_p10 = pnand %p549_p9, %p543_p3 }
  0x1d   : > { %553 = shalt.err (!%p550_p10)
}
  0x1e   : > { %s554_s17 = scalar_lea.vmem %s699_s30, 128  ;;  %s621_s18 = smov [#allocation5]  }
  0x1f   : > { %p555_p0 = scmp.ne.s32.totalorder %s699_s30, %s554_s17  ;;  %s559_s19 = sshll.u32 %s621_s18, 4  ;;  %s560_s19 = int_to_ptr.vmem [resolvable:$false] %s559_s19 }
  0x20   : > { %s561_s21 = scalar_lea.vmem %s560_s19, 256  ;;  %p562_p13 = scmp.lt.s32.totalorder %s699_s30, %s560_s19 }
  0x21   : > { %p557_p2 = pnand %p555_p0, %p541_p1  ;;  %p563_p4 = scmp.lt.s32.totalorder %s561_s21, %s554_s17 }
  0x23   : > { %p558_p12 = pneg %p557_p2  ;;  %p564_p5 = por %p563_p4, %p562_p13 }
  0x25   : > { %p565_p6 = pnand %p564_p5, %p558_p12 }
  0x27   : > { %568 = shalt.err (!%p565_p6)
}
  0x28   : > { %477 = dma.hbm_to_vmem [thread:$0]  (!%p695_p11), %s693_s28, 128, %s699_s30, %s136_s4  }
  0x29   : > { %p810_p3 = scmp.lt.s32.totalorder %s619_s14, 3  ;;  %p811_p7 = scmp.ge.s32.totalorder %s619_s14, 1 }
  0x2b   : > { %p170_p1 = pnand %p811_p7, %p810_p3 }
  0x2c   : > { %s175_s22 = sand.u32 (!%p170_p1), 1, %s603_s10  }
  0x2d   : > { %173 = sbr.rel (%p170_p1) target bundleno = 395 (0x18b), region = 28  ;;  %s461_s23 = sshll.u32 (!%p170_p1), %s175_s22, 3 }
  0x2e   : > { %s176_s25 = scalar_lea.sflag (!%p170_p1), [#allocation6], %s175_s22  ;;  %s179_s26 = scalar_lea.vmem (!%p170_p1), [#allocation5], %s461_s23 }
  0x34   : > { %594 = dma.done.wait (%p681_p8), %s176_s25, 128  }
  0x35   : > { %596 = vsyncadd (%p681_p8), %s176_s25, 4294967168  ;;  %s464_s27 = sshll.u32 %s611_s12, 8  ;;  %v238_v0 = vlaneseq  ;;  %vm229_vm0 = vcmask 2048   ;;  %v622_v2 = vmov 0.0   ;;  %vm257_vm2 = vcmask 1042432   ;;  %p211_p8 = scmp.lt.s32.totalorder %s611_s12, 1 }
  0x36   : > { %v241_v1 = vstv %s464_s27  ;;  %231 = vst.msk [vmem:[#allocation3] sm:$0x7] %vm229_vm0, %v622_v2  ;;  %230 = vst.msk [vmem:[#allocation2] sm:$0x7] %vm229_vm0, %v622_v2  ;;  %v233_v7 = vld [vmem:[%s179_s26] sm:$0x77] }
  0x37   : > { %232 = vst.msk [vmem:[#allocation4] sm:$0x7] %vm229_vm0, %v622_v2  ;;  %v239_v3 = vand.u32 127, %v238_v0  ;;  %v251_v8 = vcombine.high %v233_v7, %v233_v7  ;;  %s820_s12 = smov (!%p211_p8, %s611_s12), 1  ;;  %v297_v36 = vshrl.u32 %v238_v0, 7  ;;  %s623_s3 = smov 1  }
  0x38   : > { %s462_s20 = sshll.u32 %s820_s12, 1  ;;  %s624_s4 = smov 2   ;;  %vm365_vm6 = vcmask 7168   ;;  %vm367_vm7 = vcmask 15360   ;;  %vm369_vm8 = vcmask 18432  }
  0x39   : > { %v240_v4 = vadd.s32 128, %v239_v3  ;;  %v744_v5 = vadd.s32 %v241_v1, %v239_v3  ;;  %p214_p11 = scmp.lt.s32.totalorder %s462_s20, 3  ;;  %v300_v43 = vsub.s32 0, %v297_v36  ;;  %v304_v44 = vsub.s32 4, %v297_v36  ;;  %s463_s5 = sshll.u32 %s820_s12, 2 }
  0x3a   : > { %s224_s8 = scalar_lea.vmem %s807_s2, %s463_s5 }
  0x3b   : > { %v746_v6 = vadd.s32 %v241_v1, %v240_v4  ;;  %vm244_vm1 = vcmp.lt.s32.totalorder %v744_v5, 510  ;;  %s822_s20 = smov (!%p214_p11, %s462_s20), 3 }
  0x3c   : > { %v253_v9 = vsel %vm244_vm1, %v233_v7, 0.0  ;;  %s216_s30 = scalar_lea.vmem %s806_s1, %s822_s20  ;;  %v465_v56 = vsel %vm244_vm1, 1.0, %v622_v2 }
  0x3d   : > { %vm245_vm3 = vcmp.lt.s32.totalorder %v746_v6, 510  ;;  %v258_v10 = vsel %vm257_vm2, %v253_v9, -inf  ;;  %v234_v37 = vld [vmem:[%s216_s30] sm:$0x3] }
  0x3e   : > { %v254_v11 = vsel %vm245_vm3, %v251_v8, 0.0  ;;  %v259_v12 = vrot.slane %v258_v10, 4  ;;  %v235_v42 = vunpack.c.0.s8 %v234_v37  ;;  %v466_v60 = vsel %vm245_vm3, 1.0, %v622_v2 }
  0x3f   : > { %v265_v13 = vsel %vm257_vm2, %v254_v11, -inf }
  0x40   : > { %v260_v14 = vmax.f32 %v258_v10, %v259_v12  ;;  %v266_v15 = vrot.slane %v265_v13, 4  ;;  %v301_v49 = vrot.slane %v235_v42, %v300_v43  ;;  %v305_v50 = vrot.slane %v235_v42, %v304_v44 }
  0x42   : > { %v261_v16 = vrot.slane %v260_v14, 2  ;;  %v267_v17 = vmax.f32 %v265_v13, %v266_v15  ;;  %v309_v52 = vrot.slane %v301_v49, %v300_v43  ;;  %v313_v53 = vrot.slane %v305_v50, %v300_v43  ;;  %v335_v13 = vld [vmem:[#allocation3] sm:$0x7]  ;;  %v324_v15 = vld [vmem:[#allocation2] sm:$0x7] }
  0x44   : > { %v262_v18 = vmax.f32 %v260_v14, %v261_v16  ;;  %v268_v19 = vrot.slane %v267_v17, 2  ;;  %vm314_vm4 = vcmp.eq.s32.totalorder %v309_v52, %v297_v36  ;;  %vm315_vm5 = vcmp.eq.s32.totalorder %v313_v53, %v297_v36 }
  0x45   : > { %v467_v54 = vsel %vm314_vm4, 1.0, %v622_v2  ;;  %v468_v57 = vsel %vm315_vm5, 1.0, %v622_v2 }
  0x46   : > { %v263_v20 = vrot.slane %v262_v18, 1  ;;  %v269_v21 = vmax.f32 %v267_v17, %v268_v19  ;;  %v322_v61 = vmul.f32 %v467_v54, %v465_v56  ;;  %v323_v0 = vmul.f32 %v468_v57, %v466_v60  ;;  %v343_v17 = vld [vmem:[#allocation4] sm:$0x7] }
  0x48   : > { %v264_v22 = vmax.f32 %v262_v18, %v263_v20  ;;  %v270_v23 = vrot.slane %v269_v21, 1  ;;  %v344_v7 = vsel %vm257_vm2, %v322_v61, 0.0  ;;  %v345_v8 = vsel %vm257_vm2, %v323_v0, 0.0 }
  0x49   : > { %v346_v6 = vadd.f32 %v345_v8, %v344_v7 }
  0x4a   : > { %v271_v24 = vmax.f32 %v269_v21, %v270_v23  ;;  %v272_v25 = vsub.f32 %v253_v9, %v264_v22 }
  0x4c   : > { %v273_v26 = vsub.f32 %v254_v11, %v271_v24  ;;  %v274_v27 = vmul.f32 1.442695, %v272_v25 }
  0x4e   : > { %531 = vpow2.f32 %v274_v27  ;;  %v276_v28 = vmul.f32 1.442695, %v273_v26 }
  0x50   : > { %533 = vpow2.f32 %v276_v28 }
  0x58   : > { %v532_v29 = vpop.eup %531 }
  0x59   : > { %v278_v30 = vsel %vm257_vm2, %v532_v29, 0.0 }
  0x5a   : > { %v534_v31 = vpop.eup %533  ;;  %v279_v32 = vrot.slane %v278_v30, 4 }
  0x5b   : > { %v285_v33 = vsel %vm257_vm2, %v534_v31, 0.0 }
  0x5c   : > { %v280_v34 = vadd.f32 %v279_v32, %v278_v30  ;;  %v286_v35 = vrot.slane %v285_v33, 4 }
  0x5e   : > { %v281_v38 = vrot.slane %v280_v34, 2  ;;  %v287_v39 = vadd.f32 %v286_v35, %v285_v33 }
  0x60   : > { %v282_v40 = vadd.f32 %v281_v38, %v280_v34  ;;  %v288_v41 = vrot.slane %v287_v39, 2 }
  0x62   : > { %v283_v45 = vrot.slane %v282_v40, 1  ;;  %v289_v46 = vadd.f32 %v288_v41, %v287_v39 }
  0x64   : > { %v284_v47 = vadd.f32 %v283_v45, %v282_v40  ;;  %v290_v48 = vrot.slane %v289_v46, 1 }
  0x66   : > { %v291_v51 = vadd.f32 %v290_v48, %v289_v46  ;;  %535 = vrcp.f32 %v284_v47 }
  0x68   : > { %537 = vrcp.f32 %v291_v51 }
  0x70   : > { %v536_v55 = vpop.eup %535 }
  0x71   : > { %v293_v58 = vmul.f32 %v536_v55, %v532_v29 }
  0x72   : > { %v538_v59 = vpop.eup %537 }
  0x73   : > { %v295_v62 = vmul.f32 %v538_v59, %v534_v31  ;;  %v320_v63 = vmul.f32 %v465_v56, %v293_v58 }
  0x75   : > { %v321_v1 = vmul.f32 %v466_v60, %v295_v62  ;;  %v336_v3 = vsel %vm257_vm2, %v320_v63, 0.0  ;;  %v325_v4 = vmul.f32 %v322_v61, %v320_v63 }
  0x77   : > { %v337_v5 = vsel %vm257_vm2, %v321_v1, 0.0  ;;  %v326_v9 = vmul.f32 %v323_v0, %v321_v1  ;;  %v327_v10 = vsel %vm257_vm2, %v325_v4, 0.0 }
  0x78   : > { %v338_v11 = vadd.f32 %v337_v5, %v336_v3 }
  0x79   : > { %v328_v2 = vsel %vm257_vm2, %v326_v9, 0.0 }
  0x7a   : > { %339 = vadd.xlane.f32.xlu0 %v338_v11  ;;  %v329_v12 = vadd.f32 %v328_v2, %v327_v10 }
  0x7c   : > { %330 = vadd.xlane.f32.xlu1 %v329_v12 }
  0x7e   : > { %347 = vadd.xlane.f32.xlu0 %v346_v6 }
 0x107   : > { %v340_v14 = vpop.xlane.xlu0 %339 }
 0x108   : > { %v341_v16 = vadd.f32 %v340_v14, %v335_v13 }
 0x109   : > { %v331_v18 = vpop.xlane.xlu1 %330 }
 0x10a   : > { %342 = vst.msk [vmem:[#allocation3] sm:$0x7] %vm229_vm0, %v341_v16  ;;  %v332_v19 = vadd.f32 %v331_v18, %v324_v15 }
 0x10b   : > { %v348_v20 = vpop.xlane.xlu0 %347 }
 0x10c   : > { %v349_v21 = vadd.f32 %v348_v20, %v343_v17  ;;  %334 = vst.msk [vmem:[#allocation2] sm:$0x7] %vm229_vm0, %v332_v19 }
 0x10e   : > { %350 = vst.msk [vmem:[#allocation4] sm:$0x7] %vm229_vm0, %v349_v21 }
 0x111   : > { %v355_v22 = vld [vmem:[#allocation3] sm:$0x7] }
 0x112   : > { %358 = vrot.lane.b32.xlu1 %v355_v22, %s623_s3 }
 0x113   : > { %v354_v25 = vld [vmem:[#allocation2] sm:$0x7] }
 0x115   : > { %v356_v23 = vld [vmem:[#allocation4] sm:$0x7] }
 0x116   : > { %362 = vrot.lane.b32.xlu0 %v356_v23, %s624_s4 }
 0x184   : > { %v359_v24 = vpop.permute.xlu1 %358 }
 0x185   : > { %v366_v26 = vsel %vm365_vm6, %v354_v25, %v359_v24 }
 0x188   : > { %v363_v27 = vpop.permute.xlu0 %362 }
 0x189   : > { %v368_v28 = vsel %vm367_vm7, %v366_v26, %v363_v27 }
 0x18a   : > { %370 = vst.msk [vmem:[%s224_s8] sm:$0x7] %vm369_vm8, %v368_v28 }
 0x18b PF: > { %s15_s14 = sadd.s32 1, %s619_s14   ;;  %s812_s9 = smov %s603_s10 }
 0x18c   : > { %p12_p12 = scmp.ge.s32.totalorder %s15_s14, 4   ;;  %s813_s10 = smov %s607_s11 }
 0x18d   : > { %s814_s11 = smov %s688_s24  ;;  %s815_s12 = smov %s615_s13 }
 0x18e   : > { %s816_s13 = smov %s818_s16  ;;  %14 = sbr.rel (!%p12_p12) target bundleno = 4 (0x4), region = 79 }
 0x195   :  { %390 = vsyncpa [#allocation6], 1 }
 0x196   :  { %392 = vsyncpa [#allocation6 + $0x1], 1 }

</bundles_post_ra>
